<compile_context>
chip_gen: v5e
topology: v5e:2x2
jax: 0.10.0
libtpu: 0.0.40
codegen_flags: <defaults>
</compile_context>

<pallas_src>
import functools

import jax
import jax.numpy as jnp
from jax.experimental import pallas as pl
from jax.experimental.pallas import tpu as pltpu

LANES = 128
TILE_M = 8192                      # rows per block -> 4 MiB / f32 input / step
VMEM_LIMIT_BYTES = 32 * 1024 * 1024


def _dice_partial_kernel(x_ref, t_ref, inter_ref, sums_ref, *,
                         total_blocks, valid_rows_last, tile_m, has_phantom):
    # Grid: (shard p [parallel], block-within-shard i [arbitrary/reduction]).
    p = pl.program_id(0)
    i = pl.program_id(1)
    blk = p * pl.num_programs(1) + i          # global block index

    # Each shard owns its own resident (1, 128) accumulators; init on its
    # first reduction step.
    @pl.when(i == 0)
    def _init():
        inter_ref[...] = jnp.zeros_like(inter_ref)
        sums_ref[...] = jnp.zeros_like(sums_ref)

    def _accumulate(mask_rows):
        x = x_ref[...].astype(jnp.float32)
        t = t_ref[...].astype(jnp.float32)
        # sigmoid(x) = 0.5 * (tanh(x/2) + 1): keeps the transcendental on EUP.
        s = 0.5 * (jnp.tanh(x * 0.5) + 1.0)
        if mask_rows:
            rows = jax.lax.broadcasted_iota(jnp.int32, x.shape, 0)
            valid = rows < valid_rows_last
            # Mask BEFORE any multiply/accumulate so padded-row garbage/NaN
            # from the partial last block can never propagate.
            s = jnp.where(valid, s, 0.0)
            t = jnp.where(valid, t, 0.0)
        # Sublane-only reductions into lane-wide (1, 128) accumulators; the
        # cross-lane reduce happens once, in the wrapper.
        inter_ref[...] += jnp.sum(s * t, axis=0, keepdims=True)
        sums_ref[...] += jnp.sum(s + t, axis=0, keepdims=True)

    needs_row_mask = valid_rows_last != tile_m     # static Python bool

    if not needs_row_mask and not has_phantom:
        _accumulate(False)
        return

    full_limit = total_blocks - 1 if needs_row_mask else total_blocks

    @pl.when(blk < full_limit)
    def _full():
        _accumulate(False)

    if needs_row_mask:
        @pl.when(blk == total_blocks - 1)
        def _partial():
            _accumulate(True)
    # blk >= total_blocks: phantom step of the second shard -> do nothing.


def dice_loss(inputs, targets, smooth=1.0):
    """Pallas equivalent of DiceLoss.forward(inputs, targets, smooth)."""
    x = inputs.reshape(-1)
    t = targets.reshape(-1)
    n = x.shape[0]                     # static

    m_rows = n // LANES
    tail = n - m_rows * LANES

    inter = jnp.float32(0.0)
    sums = jnp.float32(0.0)

    if m_rows > 0:
        aligned = m_rows * LANES
        # Zero-copy reshape when n is lane-aligned; otherwise only the
        # 128-aligned prefix streams through Pallas (the <=127-element tail is
        # handled by the tiny XLA epilogue below -- no full padded copy).
        xp = x if tail == 0 else x[:aligned]
        tp = t if tail == 0 else t[:aligned]
        x2 = xp.reshape(m_rows, LANES)
        t2 = tp.reshape(m_rows, LANES)

        tile_m = TILE_M if m_rows >= TILE_M else m_rows
        grid_m = -(-m_rows // tile_m)              # ceil

        # Always shard across 2 when there are >= 2 blocks (robust for odd
        # grid_m on v7x); a harmless serial outer loop on single-core chips.
        num_shards = 2 if grid_m >= 2 else 1
        blocks_per_shard = -(-grid_m // num_shards)
        has_phantom = num_shards * blocks_per_shard != grid_m
        valid_rows_last = m_rows - (grid_m - 1) * tile_m   # static Python int

        kernel = functools.partial(
            _dice_partial_kernel,
            total_blocks=grid_m,
            valid_rows_last=valid_rows_last,
            tile_m=tile_m,
            has_phantom=has_phantom,
        )

        def in_map(p, i, _bps=blocks_per_shard, _last=grid_m - 1):
            # Clamp so the phantom step never issues an OOB DMA.
            return (jnp.minimum(p * _bps + i, _last), 0)

        in_spec = pl.BlockSpec((tile_m, LANES), in_map)
        part_shape = jax.ShapeDtypeStruct((num_shards, 1, LANES), jnp.float32)
        # Leading shard dim squeezed -> kernel sees (1, 128) accumulator refs.
        part_spec = pl.BlockSpec((None, 1, LANES), lambda p, i: (p, 0, 0))

        bytes_in = (x2.size * x2.dtype.itemsize) + (t2.size * t2.dtype.itemsize)
        cost = pl.CostEstimate(
            flops=7 * aligned,
            transcendentals=aligned,
            bytes_accessed=bytes_in + 2 * num_shards * LANES * 4,
        )

        inter_p, sums_p = pl.pallas_call(
            kernel,
            out_shape=(part_shape, part_shape),
            grid_spec=pltpu.PrefetchScalarGridSpec(
                num_scalar_prefetch=0,
                grid=(num_shards, blocks_per_shard),
                in_specs=[in_spec, in_spec],
                out_specs=[part_spec, part_spec],
            ),
            compiler_params=pltpu.CompilerParams(
                dimension_semantics=("parallel", "arbitrary"),
                vmem_limit_bytes=VMEM_LIMIT_BYTES,
            ),
            cost_estimate=cost,
        )(x2, t2)

        inter = inter + jnp.sum(inter_p)
        sums = sums + jnp.sum(sums_p)

    if tail:
        # <128-element ragged tail: tiny fused XLA reduction (negligible).
        xt = x[m_rows * LANES:].astype(jnp.float32)
        tt = t[m_rows * LANES:].astype(jnp.float32)
        st = jax.nn.sigmoid(xt)
        inter = inter + jnp.sum(st * tt)
        sums = sums + jnp.sum(st) + jnp.sum(tt)

    dice = (2.0 * inter + smooth) / (sums + smooth)
    return 1.0 - dice


def dice_loss_ref(inputs, targets, smooth=1.0):
    s = jax.nn.sigmoid(inputs.reshape(-1).astype(jnp.float32))
    t = targets.reshape(-1).astype(jnp.float32)
    inter = jnp.sum(s * t)
    dice = (2.0 * inter + smooth) / (jnp.sum(s) + jnp.sum(t) + smooth)
    return 1.0 - dice


if __name__ == "__main__":
    key = jax.random.PRNGKey(0)
    k1, k2, k3, k4 = jax.random.split(key, 4)

    # NCHW logits / binary masks, same convention as the PyTorch module.
    x = jax.random.normal(k1, (2, 4, 16, 16), dtype=jnp.float32)
    tgt = (jax.random.uniform(k2, (2, 4, 16, 16)) > 0.5).astype(jnp.float32)

    loss = jax.block_until_ready(dice_loss(x, tgt, smooth=1.0))
    ref = jax.block_until_ready(dice_loss_ref(x, tgt, smooth=1.0))
    assert jnp.allclose(loss, ref, rtol=1e-4, atol=1e-5), (loss, ref)

    # Ragged case (numel % 128 != 0): exercises the XLA tail epilogue.
    xr = jax.random.normal(k3, (3, 5, 11, 13), dtype=jnp.float32)
    tr = (jax.random.uniform(k4, (3, 5, 11, 13)) > 0.5).astype(jnp.float32)
    loss_r = jax.block_until_ready(dice_loss(xr, tr, smooth=1.0))
    ref_r = jax.block_until_ready(dice_loss_ref(xr, tr, smooth=1.0))
    assert jnp.allclose(loss_r, ref_r, rtol=1e-4, atol=1e-5), (loss_r, ref_r)

    print("KERNEL_OK")
</pallas_src>

<mosaic_0001>
module attributes {stable_mosaic.version = 11 : i64} {
  func.func @_dice_partial_kernel(%arg0: i32, %arg1: i32, %arg2: memref<16x128xf32, #tpu.memory_space<vmem>>, %arg3: memref<16x128xf32, #tpu.memory_space<vmem>>, %arg4: memref<1x1x128xf32, #tpu.memory_space<vmem>>, %arg5: memref<1x1x128xf32, #tpu.memory_space<vmem>>) attributes {dimension_semantics = [#tpu.dimension_semantics<parallel>, #tpu.dimension_semantics<arbitrary>], iteration_bounds = array<i64: 1, 1>, scalar_prefetch = 0 : i64, scratch_operands = 0 : i64, tpu.core_type = #tpu.core_type<tc>, window_params = [{transform_indices = @transform_0, window_bounds = array<i64: 16, 128>}, {transform_indices = @transform_1, window_bounds = array<i64: 16, 128>}, {transform_indices = @transform_2, window_bounds = array<i64: 1, 1, 128>}, {transform_indices = @transform_3, window_bounds = array<i64: 1, 1, 128>}]} {
    %c0_i32 = arith.constant 0 : i32
    %0 = arith.cmpi eq, %arg1, %c0_i32 : i32
    %1 = arith.extui %0 : i1 to i32
    %c0_i32_0 = arith.constant 0 : i32
    %2 = arith.cmpi ne, %1, %c0_i32_0 : i32
    scf.if %2 {
      %cst_20 = arith.constant 0.000000e+00 : f32
      %30 = vector.broadcast %cst_20 : f32 to vector<1x128xf32>
      %c0_21 = arith.constant 0 : index
      %c0_22 = arith.constant 0 : index
      %c0_23 = arith.constant 0 : index
      %31 = vector.load %arg4[%c0_21, %c0_22, %c0_23] : memref<1x1x128xf32, #tpu.memory_space<vmem>>, vector<1x1x128xf32>
      %32 = vector.shape_cast %31 : vector<1x1x128xf32> to vector<1x128xf32>
      %33 = vector.shape_cast %30 : vector<1x128xf32> to vector<1x1x128xf32>
      tpu.vector_store %arg4[%c0_21, %c0_22, %c0_23], %33 {strides = array<i32>} : memref<1x1x128xf32, #tpu.memory_space<vmem>>, vector<1x1x128xf32>,
      %cst_24 = arith.constant 0.000000e+00 : f32
      %34 = vector.broadcast %cst_24 : f32 to vector<1x128xf32>
      %c0_25 = arith.constant 0 : index
      %c0_26 = arith.constant 0 : index
      %c0_27 = arith.constant 0 : index
      %35 = vector.load %arg5[%c0_25, %c0_26, %c0_27] : memref<1x1x128xf32, #tpu.memory_space<vmem>>, vector<1x1x128xf32>
      %36 = vector.shape_cast %35 : vector<1x1x128xf32> to vector<1x128xf32>
      %37 = vector.shape_cast %34 : vector<1x128xf32> to vector<1x1x128xf32>
      tpu.vector_store %arg5[%c0_25, %c0_26, %c0_27], %37 {strides = array<i32>} : memref<1x1x128xf32, #tpu.memory_space<vmem>>, vector<1x1x128xf32>,
    } else {
    }
    %c0 = arith.constant 0 : index
    %c0_1 = arith.constant 0 : index
    %3 = vector.load %arg2[%c0, %c0_1] : memref<16x128xf32, #tpu.memory_space<vmem>>, vector<16x128xf32>
    %c0_2 = arith.constant 0 : index
    %c0_3 = arith.constant 0 : index
    %4 = vector.load %arg3[%c0_2, %c0_3] : memref<16x128xf32, #tpu.memory_space<vmem>>, vector<16x128xf32>
    %cst = arith.constant 5.000000e-01 : f32
    %5 = vector.broadcast %cst : f32 to vector<16x128xf32>
    %6 = arith.mulf %3, %5 : vector<16x128xf32>
    %7 = math.tanh %6 : vector<16x128xf32>
    %cst_4 = arith.constant 1.000000e+00 : f32
    %8 = vector.broadcast %cst_4 : f32 to vector<16x128xf32>
    %9 = arith.addf %7, %8 : vector<16x128xf32>
    %cst_5 = arith.constant 5.000000e-01 : f32
    %10 = vector.broadcast %cst_5 : f32 to vector<16x128xf32>
    %11 = arith.mulf %10, %9 : vector<16x128xf32>
    %c0_6 = arith.constant 0 : index
    %c0_7 = arith.constant 0 : index
    %c0_8 = arith.constant 0 : index
    %12 = vector.load %arg4[%c0_6, %c0_7, %c0_8] : memref<1x1x128xf32, #tpu.memory_space<vmem>>, vector<1x1x128xf32>
    %13 = vector.shape_cast %12 : vector<1x1x128xf32> to vector<1x128xf32>
    %14 = arith.mulf %11, %4 : vector<16x128xf32>
    %cst_9 = arith.constant dense<0.000000e+00> : vector<128xf32>
    %15 = vector.multi_reduction <add>, %14, %cst_9 [0] : vector<16x128xf32> to vector<128xf32>
    %16 = vector.shape_cast %15 : vector<128xf32> to vector<1x128xf32>
    %17 = arith.addf %13, %16 : vector<1x128xf32>
    %c0_10 = arith.constant 0 : index
    %c0_11 = arith.constant 0 : index
    %c0_12 = arith.constant 0 : index
    %18 = vector.load %arg4[%c0_10, %c0_11, %c0_12] : memref<1x1x128xf32, #tpu.memory_space<vmem>>, vector<1x1x128xf32>
    %19 = vector.shape_cast %18 : vector<1x1x128xf32> to vector<1x128xf32>
    %20 = vector.shape_cast %17 : vector<1x128xf32> to vector<1x1x128xf32>
    tpu.vector_store %arg4[%c0_10, %c0_11, %c0_12], %20 {strides = array<i32>} : memref<1x1x128xf32, #tpu.memory_space<vmem>>, vector<1x1x128xf32>,
    %c0_13 = arith.constant 0 : index
    %c0_14 = arith.constant 0 : index
    %c0_15 = arith.constant 0 : index
    %21 = vector.load %arg5[%c0_13, %c0_14, %c0_15] : memref<1x1x128xf32, #tpu.memory_space<vmem>>, vector<1x1x128xf32>
    %22 = vector.shape_cast %21 : vector<1x1x128xf32> to vector<1x128xf32>
    %23 = arith.addf %11, %4 : vector<16x128xf32>
    %cst_16 = arith.constant dense<0.000000e+00> : vector<128xf32>
    %24 = vector.multi_reduction <add>, %23, %cst_16 [0] : vector<16x128xf32> to vector<128xf32>
    %25 = vector.shape_cast %24 : vector<128xf32> to vector<1x128xf32>
    %26 = arith.addf %22, %25 : vector<1x128xf32>
    %c0_17 = arith.constant 0 : index
    %c0_18 = arith.constant 0 : index
    %c0_19 = arith.constant 0 : index
    %27 = vector.load %arg5[%c0_17, %c0_18, %c0_19] : memref<1x1x128xf32, #tpu.memory_space<vmem>>, vector<1x1x128xf32>
    %28 = vector.shape_cast %27 : vector<1x1x128xf32> to vector<1x128xf32>
    %29 = vector.shape_cast %26 : vector<1x128xf32> to vector<1x1x128xf32>
    tpu.vector_store %arg5[%c0_17, %c0_18, %c0_19], %29 {strides = array<i32>} : memref<1x1x128xf32, #tpu.memory_space<vmem>>, vector<1x1x128xf32>,
    return
  }
  func.func @transform_0(%arg0: i32, %arg1: i32) -> (i32, i32) {
    %c1_i32 = arith.constant 1 : i32
    %0 = arith.muli %arg0, %c1_i32 : i32
    %1 = arith.addi %0, %arg1 : i32
    %c0_i32 = arith.constant 0 : i32
    %2 = arith.minsi %1, %c0_i32 : i32
    %c0_i32_0 = arith.constant 0 : i32
    %c0_i32_1 = arith.constant 0 : i32
    return %2, %c0_i32_0 : i32, i32
  }
  func.func @transform_1(%arg0: i32, %arg1: i32) -> (i32, i32) {
    %c1_i32 = arith.constant 1 : i32
    %0 = arith.muli %arg0, %c1_i32 : i32
    %1 = arith.addi %0, %arg1 : i32
    %c0_i32 = arith.constant 0 : i32
    %2 = arith.minsi %1, %c0_i32 : i32
    %c0_i32_0 = arith.constant 0 : i32
    %c0_i32_1 = arith.constant 0 : i32
    return %2, %c0_i32_0 : i32, i32
  }
  func.func @transform_2(%arg0: i32, %arg1: i32) -> (i32, i32, i32) {
    %c0_i32 = arith.constant 0 : i32
    %c0_i32_0 = arith.constant 0 : i32
    %c0_i32_1 = arith.constant 0 : i32
    return %arg0, %c0_i32, %c0_i32_0 : i32, i32, i32
  }
  func.func @transform_3(%arg0: i32, %arg1: i32) -> (i32, i32, i32) {
    %c0_i32 = arith.constant 0 : i32
    %c0_i32_0 = arith.constant 0 : i32
    %c0_i32_1 = arith.constant 0 : i32
    return %arg0, %c0_i32, %c0_i32_0 : i32, i32, i32
  }
}

</mosaic_0001>

<bundles_post_ra>
// kernel: tpu_custom_call.1
= control target key start
LH: loop header
LB: loop body
LE: loop exit
PB: predicated region body
PF: predicated region fallthrough
CT: control target
= control target key end

     0   :  { %9 = vsyncpa [#allocation3], 0  ;;  %s301_s0 = inlined_call_operand.hbm [shape: f32[16,128], index: 0, kind: input, shape index: {}]   ;;  %s302_s1 = inlined_call_operand.hbm [shape: f32[16,128], index: 1, kind: input, shape index: {}]   ;;  %s303_s2 = inlined_call_operand.hbm [shape: f32[1,1,128], index: 2, kind: output, shape index: {0}]   ;;  %s304_s3 = inlined_call_operand.hbm [shape: f32[1,1,128], index: 3, kind: output, shape index: {1}]  }
   0x1   :  { %10 = vsyncpa [#allocation6], 0 }
   0x2   :  { %11 = vsyncpa [#allocation4], 0 }
   0x3   :  { %12 = vsyncpa [#allocation9], 0  ;;  %s23_s14 = sshll.u32 %s301_s0, 4  ;;  %s262_s15 = smov [#allocation2]   ;;  %s24_s14 = int_to_ptr.hbm [resolvable:$true] %s23_s14 }
   0x4   :  { %s25_s16 = sshll.u32 %s262_s15, 4  ;;  %s42_s19 = sshll.u32 %s302_s1, 4  ;;  %s26_s16 = int_to_ptr.vmem [resolvable:$true] %s25_s16  ;;  %s43_s19 = int_to_ptr.hbm [resolvable:$true] %s42_s19 }
   0x5   :  { %s263_s20 = smov 128   ;;  %s264_s21 = smov 8  }
   0x6   :  { %31 = dma.hbm_to_vmem [thread:$0]  %s24_s14, 256, %s26_s16, [#allocation3], %s263_s20, %s263_s20, %s264_s21  }
   0x7   :  { %s265_s22 = smov [#allocation5]  }
   0x8   :  { %s44_s23 = sshll.u32 %s265_s22, 4  ;;  %s45_s23 = int_to_ptr.vmem [resolvable:$true] %s44_s23 }
   0x9   :  { %50 = dma.hbm_to_vmem [thread:$0]  %s43_s19, 256, %s45_s23, [#allocation6], %s263_s20, %s263_s20, %s264_s21  }
   0xa   :  { %254 = dma.done.wait [#allocation3], 256  }
   0xb   :  { %255 = vsyncadd [#allocation3], 4294967040 }
   0xc   :  { %256 = dma.done.wait [#allocation6], 256  }
   0xd   :  { %257 = vsyncadd [#allocation6], 4294967040  ;;  %v266_v0 = vmov 0.0   ;;  %v73_v1 = vld [vmem:[#allocation2] sm:$0xff]  ;;  %v74_v2 = vld [vmem:[#allocation2 + $0x8] sm:$0xff]  ;;  %s267_s0 = smov [#allocation7]  }
   0xe   :  { %71 = vst [vmem:[#allocation7] sm:$0x1] %v266_v0  ;;  %v77_v3 = vmul.f32 0.5, %v73_v1  ;;  %v78_v4 = vmul.f32 0.5, %v74_v2  ;;  %v75_v8 = vld [vmem:[#allocation5] sm:$0xff]  ;;  %v76_v10 = vld [vmem:[#allocation5 + $0x8] sm:$0xff] }
   0xf   :  { %72 = vst [vmem:[#allocation8] sm:$0x1] %v266_v0  ;;  %s114_s1 = sshll.u32 %s267_s0, 4  ;;  %s116_s26 = sshll.u32 %s303_s2, 4  ;;  %s115_s1 = int_to_ptr.vmem [resolvable:$true] %s114_s1  ;;  %s117_s26 = int_to_ptr.hbm [resolvable:$true] %s116_s26 }
  0x10   :  { %154 = vtanh.f32 %v77_v3  ;;  %s268_s27 = smov [#allocation8]   ;;  %s127_s4 = sshll.u32 %s304_s3, 4  ;;  %s128_s4 = int_to_ptr.hbm [resolvable:$true] %s127_s4 }
  0x11   :  { %156 = vtanh.f32 %v78_v4  ;;  %s125_s28 = sshll.u32 %s268_s27, 4  ;;  %s126_s28 = int_to_ptr.vmem [resolvable:$true] %s125_s28 }
  0x15   :  { %v85_v29 = vld [vmem:[#allocation7] sm:$0x1] }
  0x16   :  { %v155_v5 = vpop.eup %154  ;;  %v97_v30 = vld [vmem:[#allocation8] sm:$0x1] }
  0x17   :  { %v157_v6 = vpop.eup %156  ;;  %v81_v7 = vadd.f32 1.0, %v155_v5 }
  0x18   :  { %v82_v9 = vadd.f32 1.0, %v157_v6 }
  0x19   :  { %v83_v11 = vmul.f32 0.5, %v81_v7 }
  0x1a   :  { %v84_v12 = vmul.f32 0.5, %v82_v9 }
  0x1b   :  { %v86_v13 = vmul.f32 %v83_v11, %v75_v8  ;;  %v98_v14 = vadd.f32 %v83_v11, %v75_v8 }
  0x1c   :  { %v87_v15 = vmul.f32 %v84_v12, %v76_v10  ;;  %v99_v16 = vadd.f32 %v84_v12, %v76_v10 }
  0x1e   :  { %v88_v17 = vadd.f32 %v87_v15, %v86_v13  ;;  %v100_v18 = vadd.f32 %v99_v16, %v98_v14 }
  0x20   :  { %v89_v19 = vrot.slane %v88_v17, 4  ;;  %v101_v20 = vrot.slane %v100_v18, 4 }
  0x22   :  { %v90_v21 = vadd.f32 %v89_v19, %v88_v17  ;;  %v102_v22 = vadd.f32 %v101_v20, %v100_v18 }
  0x24   :  { %v91_v23 = vrot.slane %v90_v21, 2  ;;  %v103_v24 = vrot.slane %v102_v22, 2 }
  0x26   :  { %v92_v25 = vadd.f32 %v91_v23, %v90_v21  ;;  %v104_v26 = vadd.f32 %v103_v24, %v102_v22 }
  0x28   :  { %v93_v27 = vrot.slane %v92_v25, 1  ;;  %v105_v28 = vrot.slane %v104_v26, 1 }
  0x2a   :  { %v94_v31 = vadd.f32 %v93_v27, %v92_v25  ;;  %v106_v32 = vadd.f32 %v105_v28, %v104_v26 }
  0x2c   :  { %v95_v33 = vadd.f32 %v94_v31, %v85_v29  ;;  %v107_v34 = vadd.f32 %v106_v32, %v97_v30 }
  0x2e   :  { %96 = vst [vmem:[#allocation7] sm:$0x1] %v95_v33 }
  0x2f   :  { %108 = vst [vmem:[#allocation8] sm:$0x1] %v107_v34  ;;  %119 = dma.vmem_to_hbm [thread:$0]  %s115_s1, 16, %s117_s26, [#allocation4]  }
  0x30   :  { %130 = dma.vmem_to_hbm [thread:$0]  %s126_s28, 16, %s128_s4, [#allocation9]  }
  0x31   :  { %258 = dma.done.wait [#allocation4], 16  }
  0x32   :  { %259 = vsyncadd [#allocation4], 4294967280 }
  0x33   :  { %260 = dma.done.wait [#allocation9], 16  }
  0x34   :  { %261 = vsyncadd [#allocation9], 4294967280 }
  0x35   :  { %139 = vsyncpa [#allocation3], 1 }
  0x36   :  { %140 = vsyncpa [#allocation6], 1 }
  0x37   :  { %141 = vsyncpa [#allocation4], 1 }
  0x38   :  { %142 = vsyncpa [#allocation9], 1 }

</bundles_post_ra>
